<compile_context>
chip_gen: v6e
topology: v6e:2x2x1
jax: 0.10.0
libtpu: 0.0.40
codegen_flags: <defaults>
</compile_context>

<pallas_src>
import numpy as np
import jax
import jax.numpy as jnp
from jax.experimental import pallas as pl
from jax.experimental.pallas import tpu as pltpu

NL = 5  # number of directional lights (fixed by Renderer.render)


def _round_up(x, m):
    return ((x + m - 1) // m) * m


def _device_kind():
    try:
        return jax.devices()[0].device_kind.lower()
    except Exception:
        return ""


def _default_io_dtype(kind):
    """bf16 I/O for the mem-bound shade kernel on v6e/v7x (worthwhile now that the blocks
    are sublane/lane dense); f32 on v5e / unknown."""
    if ("v6" in kind) or ("v7" in kind) or ("7x" in kind):
        return jnp.bfloat16
    return jnp.float32


# ----------------------------------------------------------------------------------
# Pallas kernel 1: orthographic projection  out = sign * scale * (v + offset)
#   sign = +1 for x, -1 for y/z   (matches `transformed[:, :, 1:] = -transformed[:, :, 1:]`)
# Layout: vertices (+ landmarks, fused) flattened to [B, R, 128] (lane/sublane dense).
# The period-3 x/y selector is built in-kernel from a 2-D iota; camera scale/tx/ty are
# scalar reads from SMEM (no mask arrays, no (B,1) padded VMEM tiles).
# ----------------------------------------------------------------------------------
def _orth_proj_kernel(cam_ref, v_ref, o_ref):
    b = pl.program_id(0)
    s = cam_ref[b, 0]            # camera scale  (SMEM scalar)
    tx = cam_ref[b, 1]
    ty = cam_ref[b, 2]

    v = v_ref[0]                 # (rows, 128) f32
    r = jax.lax.broadcasted_iota(jnp.int32, v.shape, 0)
    c = jax.lax.broadcasted_iota(jnp.int32, v.shape, 1)
    # Every tile starts at an element index that is a multiple of 3 (rows is a multiple of
    # 3 in the multi-tile case, and the single-tile case starts at 0), so the local index
    # alone determines the coordinate.  Float mod-3 is exact for indices < 2**24.
    i = (r * 128 + c).astype(jnp.float32)
    m = i - 3.0 * jnp.floor(i * (1.0 / 3.0))       # 0 -> x, 1 -> y, 2 -> z
    is_x = m < 0.5
    is_y = jnp.logical_and(m > 0.5, m < 1.5)

    off = jnp.where(is_x, tx, 0.0) + jnp.where(is_y, ty, 0.0)
    sign = jnp.where(is_x, 1.0, -1.0)
    o_ref[0] = sign * (s * (v + off))


def _choose_rows_orth(R):
    # rows a multiple of 24 (= lcm(8, 3)) so every tile starts on a coordinate boundary
    # (no per-tile phase) and stays sublane aligned.  Cap: 504 rows = 64512 elements/tile.
    cap = 504
    if R <= cap:
        return R, R                       # single tile == full dim (always a legal block)
    rows = cap
    return rows, _round_up(R, rows)


def batch_orth_proj_flip(vertices, cam_params):
    """vertices: [B, N, 3]; cam_params: [B, 3] = (scale, tx, ty).
    Returns scale*[x+tx, y+ty, z] with y and z negated (as in Renderer.forward)."""
    vertices = vertices.astype(jnp.float32)
    cam = cam_params.astype(jnp.float32)
    B, N, _ = vertices.shape
    L = N * 3
    R = -(-L // 128)
    rows, R_pad = _choose_rows_orth(R)
    Lp = R_pad * 128

    v = vertices.reshape(B, L)                              # contiguous view, no transpose
    if Lp != L:
        v = jnp.pad(v, ((0, 0), (0, Lp - L)))
    v = v.reshape(B, R_pad, 128)

    grid = (B, R_pad // rows)
    out = pl.pallas_call(
        _orth_proj_kernel,
        out_shape=jax.ShapeDtypeStruct((B, R_pad, 128), jnp.float32),
        grid=grid,
        in_specs=[
            pl.BlockSpec(memory_space=pltpu.MemorySpace.SMEM),      # cam [B, 3] scalars
            pl.BlockSpec((1, rows, 128), lambda b, t: (b, t, 0)),
        ],
        out_specs=pl.BlockSpec((1, rows, 128), lambda b, t: (b, t, 0)),
        compiler_params=pltpu.CompilerParams(
            dimension_semantics=("parallel", "parallel")),
    )(cam, v)
    return out.reshape(B, Lp)[:, :L].reshape(B, N, 3)


# ----------------------------------------------------------------------------------
# Pallas kernel 2: add_directionlight + shaded = albedo * shading   (per-pixel hot path)
# Input block (1, 6, rows, 128): channel-planar, pixels dense on (sublane, lane).
# Lights come from SMEM as [B, NL*6] f32 (unit direction | intensity/NL); the kernel is an
# unrolled scalar x vector FMA loop over the 5 lights with direct per-channel row stores.
# ----------------------------------------------------------------------------------
def _shade_kernel(lights_ref, x_ref, out_ref):
    b = pl.program_id(0)

    n0 = x_ref[0, 3].astype(jnp.float32)          # (rows, 128) normal x/y/z
    n1 = x_ref[0, 4].astype(jnp.float32)
    n2 = x_ref[0, 5].astype(jnp.float32)

    sr = jnp.zeros_like(n0)
    sg = jnp.zeros_like(n0)
    sb = jnp.zeros_like(n0)
    for l in range(NL):                           # unrolled at trace time (5 lights)
        d0 = lights_ref[b, 6 * l + 0]
        d1 = lights_ref[b, 6 * l + 1]
        d2 = lights_ref[b, 6 * l + 2]
        i0 = lights_ref[b, 6 * l + 3]
        i1 = lights_ref[b, 6 * l + 4]
        i2 = lights_ref[b, 6 * l + 5]
        ndl = jnp.clip(d0 * n0 + d1 * n1 + d2 * n2, 0.0, 1.0)
        sr = sr + ndl * i0
        sg = sg + ndl * i1
        sb = sb + ndl * i2

    out_ref[0, 0] = (x_ref[0, 0].astype(jnp.float32) * sr).astype(out_ref.dtype)
    out_ref[0, 1] = (x_ref[0, 1].astype(jnp.float32) * sg).astype(out_ref.dtype)
    out_ref[0, 2] = (x_ref[0, 2].astype(jnp.float32) * sb).astype(out_ref.dtype)


def _choose_rows_shade(R, B, io_dtype, device_kind):
    """Pick the sublane-row tile for the (rows, 128) pixel slab.  No divisibility
    requirement on R: we pad R up to a multiple of `rows`.  Only v7x (2 TensorCores)
    splits a B==1 image in two; v5e/v6e keep one maximal tile per batch element."""
    align = 16 if io_dtype == jnp.bfloat16 else 8
    cap = 512                                     # 512*128 = 65536 pixels per tile
    is_v7x = ("v7" in device_kind) or ("7x" in device_kind)
    if is_v7x and B == 1 and R > align:
        rows = min(_round_up(-(-R // 2), align), cap)     # exactly two large tiles
    elif R <= cap:
        return R, R                                        # single tile == full dim
    else:
        rows = cap
    return rows, _round_up(R, rows)


def shade_pallas(albnorm_flat, lights_flat, io_dtype, device_kind=""):
    """albnorm_flat: [B, 6, P] (rows 0:3 albedo, 3:6 normals) already in io_dtype;
    lights_flat: [B, NL*6] f32 (unit dir | intensity/NL).  Returns [B, 3, P] io_dtype."""
    B, C, P = albnorm_flat.shape
    assert C == 6
    R = -(-P // 128)
    rows, R_pad = _choose_rows_shade(R, B, io_dtype, device_kind)
    Pp = R_pad * 128

    x = albnorm_flat
    if Pp != P:
        x = jnp.pad(x, ((0, 0), (0, 0), (0, Pp - P)))
    x = x.reshape(B, 6, R_pad, 128)

    grid = (B, R_pad // rows)
    # TODO(synk): add pipeline_mode=pl.Buffered(3) on the image spec if profiling shows
    #             exposed first-fetch DMA on short per-core grids.
    out = pl.pallas_call(
        _shade_kernel,
        out_shape=jax.ShapeDtypeStruct((B, 3, R_pad, 128), io_dtype),
        grid=grid,
        in_specs=[
            pl.BlockSpec(memory_space=pltpu.MemorySpace.SMEM),      # lights [B, NL*6]
            pl.BlockSpec((1, 6, rows, 128), lambda b, t: (b, 0, t, 0)),
        ],
        out_specs=pl.BlockSpec((1, 3, rows, 128), lambda b, t: (b, 0, t, 0)),
        compiler_params=pltpu.CompilerParams(
            dimension_semantics=("parallel", "parallel")),
    )(lights_flat, x)

    out = out.reshape(B, 3, Pp)
    return out[:, :, :P] if Pp != P else out


# ----------------------------------------------------------------------------------
# Plain-JAX glue (gathers / scatter-add): face_vertices, vertex_normals
# ----------------------------------------------------------------------------------
def face_vertices_jax(vertices, faces):
    """vertices [B, N, C], faces [Bf, F, 3] -> [B, F, 3, C]."""
    if faces.shape[0] == 1 and vertices.shape[0] > 1:
        faces = jnp.broadcast_to(faces, (vertices.shape[0],) + faces.shape[1:])
    return jax.vmap(lambda v, f: v[f])(vertices, faces)


def vertex_normals_jax(vertices, faces):
    """vertices [B, NV, 3], faces [B, F, 3] -> area-weighted, normalized vertex normals.
    (eps=1e-6 as in the DECA util this mirrors; torch F.normalize default is 1e-12)."""
    def one(v, f):
        tri = v[f]                                            # [F, 3, 3]
        n = jnp.zeros_like(v)
        n = n.at[f[:, 1]].add(jnp.cross(tri[:, 2] - tri[:, 1], tri[:, 0] - tri[:, 1]))
        n = n.at[f[:, 2]].add(jnp.cross(tri[:, 0] - tri[:, 2], tri[:, 1] - tri[:, 2]))
        n = n.at[f[:, 0]].add(jnp.cross(tri[:, 1] - tri[:, 0], tri[:, 2] - tri[:, 0]))
        n = n / jnp.maximum(jnp.linalg.norm(n, axis=-1, keepdims=True), 1e-6)
        return n
    return jax.vmap(one)(vertices, faces)


# ----------------------------------------------------------------------------------
# Renderer (buffers synthesized deterministically; no asset files)
# ----------------------------------------------------------------------------------
class RendererObjPallas:
    def __init__(self, faces, image_size=16, io_dtype=None):
        self.image_size = image_size
        self.faces = faces.astype(jnp.int32)                  # [1, F, 3]
        self._device_kind = _device_kind()
        self.io_dtype = _default_io_dtype(self._device_kind) if io_dtype is None else io_dtype
        nv = int(jnp.max(faces)) + 1
        colors = jnp.full((1, nv, 3), 180.0 / 255.0, jnp.float32)
        self.face_colors = face_vertices_jax(colors, self.faces)     # [1, F, 3, 3]
        pi = np.pi
        self.constant_factor = jnp.array(
            [1 / np.sqrt(4 * pi), 2 * pi / 3 * np.sqrt(3 / (4 * pi)),
             2 * pi / 3 * np.sqrt(3 / (4 * pi)), 2 * pi / 3 * np.sqrt(3 / (4 * pi)),
             pi / 4 * 3 * np.sqrt(5 / (12 * pi)), pi / 4 * 3 * np.sqrt(5 / (12 * pi)),
             pi / 4 * 3 * np.sqrt(5 / (12 * pi)), pi / 4 * (3 / 2) * np.sqrt(5 / (12 * pi)),
             pi / 4 * (1 / 2) * np.sqrt(5 / (4 * pi))], dtype=jnp.float32)  # SH path unused here
        self._dbg = None

    def forward(self, vertices, cam_params, raster_key, **landmarks):
        # Fuse vertices + every landmark tensor into ONE orth-proj pallas_call.
        names = list(landmarks.keys())
        parts = [vertices] + [landmarks[k] for k in names]
        sizes = [int(p.shape[1]) for p in parts]
        allv = jnp.concatenate(parts, axis=1) if len(parts) > 1 else vertices
        allt = batch_orth_proj_flip(allv, cam_params)                         # Pallas kernel
        offs = np.cumsum([0] + sizes)
        transformed_vertices = allt[:, int(offs[0]):int(offs[1])]
        transformed_landmarks = {
            k: allt[:, int(offs[i + 1]):int(offs[i + 2]), :2] for i, k in enumerate(names)}

        rendered_img = self.render(vertices, transformed_vertices, raster_key)
        outputs = {'rendered_img': rendered_img, 'transformed_vertices': transformed_vertices}
        outputs.update(transformed_landmarks)
        return outputs

    def render(self, vertices, transformed_vertices, raster_key):
        B = vertices.shape[0]
        H = W = self.image_size

        light_positions = jnp.array([[-1, 1, 1], [1, 1, 1], [-1, -1, 1], [1, -1, 1], [0, 0, 1]],
                                    jnp.float32)
        light_positions = jnp.broadcast_to(light_positions[None], (B, NL, 3))
        light_intensities = jnp.ones_like(light_positions) * 1.7
        lights = jnp.concatenate([light_positions, light_intensities], axis=2)   # [B, NL, 6]
        # hoisted light preprocessing (F.normalize semantics, eps=1e-12; fold the 1/NL mean)
        d = lights[:, :, :3]
        d = d / jnp.maximum(jnp.linalg.norm(d, axis=-1, keepdims=True), 1e-12)
        it = lights[:, :, 3:] * (1.0 / NL)
        lights_flat = jnp.concatenate([d, it], axis=-1).reshape(B, NL * 6).astype(jnp.float32)

        tv = transformed_vertices.at[:, :, 2].add(10.0)
        faces = jnp.broadcast_to(self.faces, (B,) + self.faces.shape[1:])
        normals = vertex_normals_jax(vertices, faces)                              # glue
        face_normals = face_vertices_jax(normals, faces)                           # glue
        colors = jnp.broadcast_to(self.face_colors, (B,) + self.face_colors.shape[1:])
        attributes = jnp.concatenate([colors, face_normals], axis=-1)              # [B, F, 3, 6]

        # channel-planar [B, 6, P] handoff, already in io_dtype (cast fused with transpose)
        albnorm_flat, alb_f32, nrm_f32 = self._rasterize(tv, faces, attributes, raster_key)
        self._dbg = (alb_f32, nrm_f32, lights)

        shaded_flat = shade_pallas(albnorm_flat, lights_flat,
                                   self.io_dtype, self._device_kind)               # Pallas kernel
        return shaded_flat.reshape(B, 3, H, W)

    def _rasterize(self, transformed_vertices, faces, attributes, key):
        """Reproduces the barycentric-interpolation part of Renderer.rasterize.
        TODO(synk): rasterize_meshes itself is synthesized (random pix_to_face / bary coords)."""
        B = transformed_vertices.shape[0]
        H = W = self.image_size
        F_ = faces.shape[1]
        k1, k2 = jax.random.split(key, 2)
        pix_to_face = jax.random.randint(k1, (B, H, W, 1), -1, F_)
        bary = jax.random.uniform(k2, (B, H, W, 1, 3), jnp.float32, 1e-3, 1.0)
        bary = bary / jnp.sum(bary, axis=-1, keepdims=True)

        mask = pix_to_face == -1
        p2f = jnp.where(mask, 0, pix_to_face)

        def interp(attr_b, p2f_b, bary_b):
            fa = attr_b[p2f_b.reshape(-1)]                                          # [H*W, 3, D]
            pv = jnp.sum(bary_b.reshape(-1, 3)[:, :, None] * fa, axis=1)            # [H*W, D]
            return pv.reshape(H, W, -1)

        pixel_vals = jax.vmap(interp)(attributes, p2f, bary)                        # [B, H, W, 6]
        pixel_vals = jnp.where(mask.reshape(B, H, W, 1), 0.0, pixel_vals)
        chw = jnp.transpose(pixel_vals, (0, 3, 1, 2))                               # [B, 6, H, W]
        albnorm_flat = chw.astype(self.io_dtype).reshape(B, 6, H * W)               # io_dtype
        return albnorm_flat, chw[:, :3], chw[:, 3:6]


# ----------------------------------------------------------------------------------
# Pure-JAX references for validation
# ----------------------------------------------------------------------------------
def batch_orth_proj_flip_ref(X, cam):
    cam_ = cam[:, None, :]
    Xt = jnp.concatenate([X[:, :, :2] + cam_[:, :, 1:], X[:, :, 2:]], axis=2)
    Xn = cam_[:, :, 0:1] * Xt
    return jnp.concatenate([Xn[:, :, :1], -Xn[:, :, 1:]], axis=2)


def add_directionlight_ref(normals, lights):
    d = lights[:, :, :3]
    inten = lights[:, :, 3:]
    dn = d / jnp.maximum(jnp.linalg.norm(d, axis=-1, keepdims=True), 1e-12)
    ndl = jnp.clip(jnp.sum(normals[:, None, :, :] * dn[:, :, None, :], axis=-1), 0.0, 1.0)
    return jnp.mean(ndl[..., None] * inten[:, :, None, :], axis=1)                  # [B, P, 3]


# ----------------------------------------------------------------------------------
if __name__ == "__main__":
    B, NV, NF, NLMK, IMG = 2, 64, 96, 8, 16

    key = jax.random.PRNGKey(0)
    kv, kc, kl, kr = jax.random.split(key, 4)
    vertices = jax.random.normal(kv, (B, NV, 3), jnp.float32)
    cam_params = jnp.array([1.0, 0.0, 0.0], jnp.float32)[None] + \
                 0.1 * jax.random.normal(kc, (B, 3), jnp.float32)
    lmk = jax.random.normal(kl, (B, NLMK, 3), jnp.float32)

    # deterministic synthetic face topology (stands in for the .obj + FLAME mask assets)
    faces_np = np.random.RandomState(0).randint(0, NV, size=(1, NF, 3)).astype(np.int32)
    renderer = RendererObjPallas(jnp.asarray(faces_np), image_size=IMG)

    outputs = renderer.forward(vertices, cam_params, kr, lmk=lmk)
    jax.block_until_ready(outputs['rendered_img'])

    # --- validate against pure-JAX references ---
    tv_ref = batch_orth_proj_flip_ref(vertices, cam_params)
    np.testing.assert_allclose(np.asarray(outputs['transformed_vertices']),
                               np.asarray(tv_ref), rtol=1e-5, atol=1e-5)
    lmk_ref = batch_orth_proj_flip_ref(lmk, cam_params)[..., :2]
    np.testing.assert_allclose(np.asarray(outputs['lmk']),
                               np.asarray(lmk_ref), rtol=1e-5, atol=1e-5)

    albedo_images, normal_images, lights = renderer._dbg
    io_dtype = renderer.io_dtype
    # reference computed from inputs quantized the same way the kernel sees them
    albedo_cmp = albedo_images.astype(io_dtype).astype(jnp.float32)
    normal_cmp = normal_images.astype(io_dtype).astype(jnp.float32)
    P = IMG * IMG
    normals_flat = jnp.transpose(normal_cmp.reshape(B, 3, P), (0, 2, 1))              # [B, P, 3]
    shading_ref = add_directionlight_ref(normals_flat, lights)                        # [B, P, 3]
    shading_img = jnp.transpose(shading_ref.reshape(B, IMG, IMG, 3), (0, 3, 1, 2))
    shaded_ref = albedo_cmp * shading_img
    tol = 1e-5 if io_dtype == jnp.float32 else 2e-2
    got = np.asarray(outputs['rendered_img'].astype(jnp.float32))
    np.testing.assert_allclose(got, np.asarray(shaded_ref), rtol=tol, atol=tol)

    print("KERNEL_OK")
</pallas_src>

<mosaic_0001>
module attributes {stable_mosaic.version = 11 : i64} {
  func.func @_orth_proj_kernel(%arg0: i32, %arg1: i32, %arg2: memref<2x3xf32, #tpu.memory_space<smem>>, %arg3: memref<1x2x128xf32, #tpu.memory_space<vmem>>, %arg4: memref<1x2x128xf32, #tpu.memory_space<vmem>>) attributes {dimension_semantics = [#tpu.dimension_semantics<parallel>, #tpu.dimension_semantics<parallel>], iteration_bounds = array<i64: 2, 1>, scalar_prefetch = 0 : i64, scratch_operands = 0 : i64, tpu.core_type = #tpu.core_type<tc>, window_params = [{transform_indices = @transform_0, window_bounds = array<i64: 2, 3>}, {transform_indices = @transform_1, window_bounds = array<i64: 1, 2, 128>}, {transform_indices = @transform_2, window_bounds = array<i64: 1, 2, 128>}]} {
    %0 = arith.index_cast %arg0 : i32 to index
    %c0 = arith.constant 0 : index
    %1 = memref.load %arg2[%0, %c0] : memref<2x3xf32, #tpu.memory_space<smem>>
    %2 = arith.index_cast %arg0 : i32 to index
    %c1 = arith.constant 1 : index
    %3 = memref.load %arg2[%2, %c1] : memref<2x3xf32, #tpu.memory_space<smem>>
    %4 = arith.index_cast %arg0 : i32 to index
    %c2 = arith.constant 2 : index
    %5 = memref.load %arg2[%4, %c2] : memref<2x3xf32, #tpu.memory_space<smem>>
    %c0_0 = arith.constant 0 : index
    %c0_1 = arith.constant 0 : index
    %c0_2 = arith.constant 0 : index
    %6 = vector.load %arg3[%c0_0, %c0_1, %c0_2] : memref<1x2x128xf32, #tpu.memory_space<vmem>>, vector<1x2x128xf32>
    %7 = vector.shape_cast %6 : vector<1x2x128xf32> to vector<2x128xf32>
    %8 = tpu.iota {dimensions = array<i32: 0>} : vector<2x128xi32>
    %9 = tpu.iota {dimensions = array<i32: 1>} : vector<2x128xi32>
    %c128_i32 = arith.constant 128 : i32
    %10 = vector.broadcast %c128_i32 : i32 to vector<2x128xi32>
    %11 = arith.muli %8, %10 : vector<2x128xi32>
    %12 = arith.addi %11, %9 : vector<2x128xi32>
    %13 = arith.sitofp %12 : vector<2x128xi32> to vector<2x128xf32>
    %cst = arith.constant 0.333333343 : f32
    %14 = vector.broadcast %cst : f32 to vector<2x128xf32>
    %15 = arith.mulf %13, %14 : vector<2x128xf32>
    %16 = math.floor %15 : vector<2x128xf32>
    %cst_3 = arith.constant 3.000000e+00 : f32
    %17 = vector.broadcast %cst_3 : f32 to vector<2x128xf32>
    %18 = arith.mulf %17, %16 : vector<2x128xf32>
    %19 = arith.subf %13, %18 : vector<2x128xf32>
    %cst_4 = arith.constant 5.000000e-01 : f32
    %20 = vector.broadcast %cst_4 : f32 to vector<2x128xf32>
    %21 = arith.cmpf olt, %19, %20 : vector<2x128xf32>
    %cst_5 = arith.constant 5.000000e-01 : f32
    %22 = vector.broadcast %cst_5 : f32 to vector<2x128xf32>
    %23 = arith.cmpf ogt, %19, %22 : vector<2x128xf32>
    %cst_6 = arith.constant 1.500000e+00 : f32
    %24 = vector.broadcast %cst_6 : f32 to vector<2x128xf32>
    %25 = arith.cmpf olt, %19, %24 : vector<2x128xf32>
    %26 = arith.andi %23, %25 : vector<2x128xi1>
    %cst_7 = arith.constant 0.000000e+00 : f32
    %27 = vector.broadcast %3 : f32 to vector<2x128xf32>
    %28 = vector.broadcast %cst_7 : f32 to vector<2x128xf32>
    %29 = arith.select %21, %27, %28 : vector<2x128xi1>, vector<2x128xf32>
    %cst_8 = arith.constant 0.000000e+00 : f32
    %30 = vector.broadcast %5 : f32 to vector<2x128xf32>
    %31 = vector.broadcast %cst_8 : f32 to vector<2x128xf32>
    %32 = arith.select %26, %30, %31 : vector<2x128xi1>, vector<2x128xf32>
    %33 = arith.addf %29, %32 : vector<2x128xf32>
    %cst_9 = arith.constant 1.000000e+00 : f32
    %cst_10 = arith.constant -1.000000e+00 : f32
    %34 = vector.broadcast %cst_9 : f32 to vector<2x128xf32>
    %35 = vector.broadcast %cst_10 : f32 to vector<2x128xf32>
    %36 = arith.select %21, %34, %35 : vector<2x128xi1>, vector<2x128xf32>
    %37 = arith.addf %7, %33 : vector<2x128xf32>
    %38 = vector.broadcast %1 : f32 to vector<2x128xf32>
    %39 = arith.mulf %38, %37 : vector<2x128xf32>
    %40 = arith.mulf %36, %39 : vector<2x128xf32>
    %c0_11 = arith.constant 0 : index
    %c0_12 = arith.constant 0 : index
    %c0_13 = arith.constant 0 : index
    %41 = vector.load %arg4[%c0_11, %c0_12, %c0_13] : memref<1x2x128xf32, #tpu.memory_space<vmem>>, vector<1x2x128xf32>
    %42 = vector.shape_cast %41 : vector<1x2x128xf32> to vector<2x128xf32>
    %43 = vector.shape_cast %40 : vector<2x128xf32> to vector<1x2x128xf32>
    tpu.vector_store %arg4[%c0_11, %c0_12, %c0_13], %43 {strides = array<i32>} : memref<1x2x128xf32, #tpu.memory_space<vmem>>, vector<1x2x128xf32>,
    return
  }
  func.func @transform_0(%arg0: i32, %arg1: i32) -> (i32, i32) {
    %c0_i32 = arith.constant 0 : i32
    %c0_i32_0 = arith.constant 0 : i32
    %c0_i32_1 = arith.constant 0 : i32
    return %c0_i32, %c0_i32_0 : i32, i32
  }
  func.func @transform_1(%arg0: i32, %arg1: i32) -> (i32, i32, i32) {
    %c0_i32 = arith.constant 0 : i32
    %c0_i32_0 = arith.constant 0 : i32
    return %arg0, %arg1, %c0_i32 : i32, i32, i32
  }
  func.func @transform_2(%arg0: i32, %arg1: i32) -> (i32, i32, i32) {
    %c0_i32 = arith.constant 0 : i32
    %c0_i32_0 = arith.constant 0 : i32
    return %arg0, %arg1, %c0_i32 : i32, i32, i32
  }
}

</mosaic_0001>

<bundles_post_ra>
// kernel: tpu_custom_call.1
= control target key start
LH: loop header
LB: loop body
LE: loop exit
PB: predicated region body
PF: predicated region fallthrough
CT: control target
= control target key end

     0   :  { %7 = vsyncpa [#allocation5], 0  ;;  %s732_s0 = inlined_call_operand.hbm [shape: f32[2,3], index: 0, kind: input, shape index: {}]   ;;  %s733_s1 = inlined_call_operand.hbm [shape: f32[2,2,128], index: 1, kind: input, shape index: {}]   ;;  %s734_s2 = inlined_call_operand.hbm [shape: f32[2,2,128], index: 2, kind: output, shape index: {}]  }
   0x1   :  { %8 = vsyncpa [#allocation3], 0 }
   0x2   :  { %10 = vsyncpa [#allocation3 + $0x1], 0 }
   0x3   :  { %11 = vsyncpa [#allocation4], 0 }
   0x4   :  { %13 = vsyncpa [#allocation4 + $0x1], 0  ;;  %s562_s9 = smov 0   ;;  %s564_s10 = smov 0  }
   0x5   :  { %s566_s11 = smov 0   ;;  %s568_s12 = smov 0  }
   0x6   :  { %s570_s13 = smov 0   ;;  %s572_s14 = smov 0  }
   0x7 LB: > { %s328_s15 = sadd.s32 4294967295, %s541_s14   ;;  %s329_s16 = sadd.s32 4294967294, %s541_s14   ;;  %s541_s14 = sphi %s572_s14, %s19_s14   ;;  %s537_s13 = sphi %s570_s13, %s751_s13   ;;  %s533_s12 = sphi %s568_s12, %s750_s12   ;;  %s529_s11 = sphi %s566_s11, %s749_s11   ;;  %s525_s10 = sphi %s564_s10, %s748_s10   ;;  %s521_s9 = sphi %s562_s9, %s747_s9  }
   0x8   : > { %p74_p0 = scmp.ne.s32.totalorder %s525_s10, %s521_s9  ;;  %p596_p1 = scmp.eq.s32.totalorder %s328_s15, 0 }
   0x9   : > { %p600_p2 = scmp.eq.s32.totalorder %s328_s15, 1  ;;  %p106_p3 = scmp.eq.s32.totalorder %s329_s16, 1 }
   0xa   : > { %p606_p4 = por %p596_p1, %p74_p0  ;;  %p330_p5 = scmp.ge.s32.totalorder %s541_s14, 1 }
   0xb   : > { %p611_p6 = por %p106_p3, %p74_p0  ;;  %p113_p7 = scmp.lt.s32.totalorder %s541_s14, 3 }
   0xc   : > { %s31_s22 = sadd.s32 1, %s537_s13  ;;  %s61_s23 = sadd.s32 1, %s529_s11 }
   0xd   : > { %s739_s20 = scalar_select %p611_p6, 1, 0 }
   0xe   : > { %p616_p8 = pnand %p330_p5, %p113_p7  ;;  %p33_p12 = scmp.ge.s32.totalorder %s31_s22, 2 }
   0xf   : > { %p68_p13 = scmp.ne.s32.totalorder %s529_s11, %s525_s10  ;;  %p69_p0 = scmp.eq.s32.totalorder %s541_s14, 0 }
  0x10   : > { %p352_p10 = pneg %p616_p8  ;;  %s543_s24 = smov [#allocation2]  }
  0x11   : > { %s753_s22 = smov (%p33_p12, %s31_s22), 0  ;;  %p635_p3 = por %p69_p0, %p68_p13 }
  0x12   : > { %p353_p11 = pnand %p352_p10, %p596_p1  ;;  %p641_p5 = por %p600_p2, %p68_p13 }
  0x13   : > { %s56_s29 = ssub.s32 %s537_s13, %s753_s22  ;;  %p365_p7 = scmp.lt.s32.totalorder %s541_s14, 2 }
  0x14   : > { %355 = dma.hbm_to_smem (!%p353_p11), %s732_s0, 32, %s543_s24, [#allocation5]  }
  0x15   : > { %s742_s28 = scalar_select %p641_p5, 1, 0 }
  0x16   : > { %p59_p10 = scmp.eq.s32.totalorder %s56_s29, 0  ;;  %s135_s30 = sand.u32 1, %s529_s11  }
  0x17   : > { %s333_s3 = sshll.u32 %s135_s30, 1  ;;  %s334_s5 = sshll.u32 %s537_s13, 5 }
  0x18   : > { %s650_s4 = scalar_select %p59_p10, %s529_s11, %s61_s23  }
  0x19   : > { %s145_s8 = scalar_lea.hbm %s733_s1, %s334_s5  ;;  %s139_s15 = scalar_lea.vmem [#allocation6], %s333_s3 }
  0x1a   : > { %s147_s16 = sshll.u32 %s139_s15, 4  ;;  %p658_p2 = pnand %p365_p7, %p635_p3  ;;  %s148_s16 = int_to_ptr.vmem [resolvable:$true] %s147_s16 }
  0x1b   : > { %s136_s24 = scalar_lea.sflag [#allocation3], %s135_s30  ;;  %s442_s25 = scalar_lea.vmem %s148_s16, 32 }
  0x1c   : > { %p431_p11 = pneg %p658_p2  ;;  %p443_p12 = scmp.ne.s32.totalorder %s148_s16, %s442_s25 }
  0x1d   : > { %s544_s23 = smov [#allocation6]  }
  0x1e   : > { %p445_p13 = pnand %p443_p12, %p431_p11  ;;  %s447_s26 = sshll.u32 %s544_s23, 4  ;;  %s448_s26 = int_to_ptr.vmem [resolvable:$false] %s447_s26 }
  0x1f   : > { %s449_s29 = scalar_lea.vmem %s448_s26, 64  ;;  %p450_p10 = scmp.lt.s32.totalorder %s148_s16, %s448_s26 }
  0x20   : > { %p446_p0 = pneg %p445_p13  ;;  %p451_p9 = scmp.lt.s32.totalorder %s449_s29, %s442_s25 }
  0x22   : > { %p452_p6 = por %p451_p9, %p450_p10 }
  0x24   : > { %p453_p5 = pnand %p452_p6, %p446_p0 }
  0x26   : > { %456 = shalt.err (!%p453_p5)
}
  0x27   : > { %359 = dma.hbm_to_vmem [thread:$0]  (!%p658_p2), %s145_s8, 32, %s148_s16, %s136_s24  }
  0x28   : > { %156 = sbr.rel (%p616_p8) target bundleno = 94 (0x5e), region = 28 }
  0x2d   : > { %508 = dma.done.wait (%p596_p1), [#allocation5], 32  }
  0x2e   : > { %510 = vsyncadd (%p596_p1), [#allocation5], 4294967264  ;;  %s673_s27 = sand.u32 1, %s525_s10  }
  0x2f   : > { %s337_s30 = sshll.u32 %s673_s27, 1  ;;  %s163_s3 = scalar_lea.sflag [#allocation3], %s673_s27 }
  0x30   : > { %s166_s5 = scalar_lea.vmem [#allocation6], %s337_s30 }
  0x31   : > { %512 = dma.done.wait (%p606_p4), %s163_s3, 32  }
  0x32   : > { %514 = vsyncadd (%p606_p4), %s163_s3, 4294967264 }
  0x33   : > { %171 = sfence }
  0x34   : > { %v195_v0 = vlaneseq  ;;  %s339_s17 = sshll.u32 %s533_s12, 7  ;;  %v194_v13 = vld [vmem:[%s166_s5] sm:$0x3]  ;;  %s187_s19 = scalar_lea.vmem [#allocation7], %s337_s30  ;;  %v545_v18 = vmov -1.0  }
  0x35   : > { %s190_s21 = sadd.s32 1, %s339_s17  ;;  %s192_s6 = sadd.s32 2, %s339_s17 }
  0x36   : > { %v196_v1 = vshrl.u32 %v195_v0, 7  ;;  %v198_v2 = vand.u32 127, %v195_v0  ;;  %s191_s7 = sld [smem:[#allocation2 + %s190_s21]]  ;;  %s236_s16 = sshll.u32 %s187_s19, 4  ;;  %s687_s16 = int_to_ptr.vmem [resolvable:$true] %s236_s16 }
  0x37   : > { %s193_s8 = sld [smem:[#allocation2 + %s192_s6]]  ;;  %s341_s18 = sshll.u32 %s533_s12, 5 }
  0x38   : > { %v199_v3 = vmul.u32 128, %v196_v1  ;;  %s189_s15 = sld [smem:[#allocation2 + %s339_s17]]  ;;  %s234_s23 = scalar_lea.hbm %s734_s2, %s341_s18 }
  0x39   : > { %s222_s26 = scalar_lea.sflag [#allocation4], %s673_s27  ;;  %s457_s29 = scalar_lea.vmem %s687_s16, 32 }
  0x3a   : > { %v200_v4 = vadd.s32 %v199_v3, %v198_v2  ;;  %p458_p1 = scmp.ne.s32.totalorder %s687_s16, %s457_s29  ;;  %p744_p4 = scmp.ne.s32.totalorder %s742_s28, 0 }
  0x3b   : > { %s546_s30 = smov [#allocation7]  }
  0x3c   : > { %v201_v5 = vcvt.s32.f32 %v200_v4  ;;  %v210_v10 = vstv %s191_s7  ;;  %p459_p6 = pnand %p458_p1, %p744_p4  ;;  %s461_s12 = sshll.u32 %s546_s30, 4  ;;  %s462_s12 = int_to_ptr.vmem [resolvable:$false] %s461_s12 }
  0x3d   : > { %v212_v11 = vstv %s193_s8  ;;  %s463_s3 = scalar_lea.vmem %s462_s12, 64  ;;  %p464_p9 = scmp.lt.s32.totalorder %s687_s16, %s462_s12 }
  0x3e   : > { %v202_v6 = vmul.f32 0.33333334, %v201_v5  ;;  %v217_v16 = vstv %s189_s15  ;;  %p460_p8 = pneg %p459_p6  ;;  %p465_p3 = scmp.lt.s32.totalorder %s463_s3, %s457_s29 }
  0x40   : > { %v203_v7 = vfloor.f32 %v202_v6  ;;  %p466_p5 = por %p465_p3, %p464_p9 }
  0x42   : > { %v204_v8 = vmul.f32 3.0, %v203_v7  ;;  %p467_p7 = pnand %p466_p5, %p460_p8 }
  0x44   : > { %v205_v9 = vsub.f32 %v201_v5, %v204_v8 }
  0x46   : > { %vm206_vm0 = vcmp.lt.f32.partialorder %v205_v9, 0.5  ;;  %vm207_vm1 = vcmp.gt.f32.partialorder %v205_v9, 0.5  ;;  %vm208_vm2 = vcmp.lt.f32.partialorder %v205_v9, 1.5 }
  0x47   : > { %vm209_vm3 = vmand %vm207_vm1, %vm208_vm2  ;;  %v211_v12 = vsel %vm206_vm0, %v210_v10, 0.0  ;;  %v215_v19 = vsel %vm206_vm0, 1.0, %v545_v18 }
  0x48   : > { %v213_v14 = vsel %vm209_vm3, %v212_v11, 0.0 }
  0x49   : > { %v214_v15 = vadd.f32 %v213_v14, %v211_v12 }
  0x4b   : > { %v216_v17 = vadd.f32 %v214_v15, %v194_v13 }
  0x4d   : > { %v218_v20 = vmul.f32 %v217_v16, %v216_v17 }
  0x4f   : > { %v219_v21 = vmul.f32 %v218_v20, %v215_v19 }
  0x51   : > { %220 = vst [vmem:[%s187_s19] sm:$0x3] %v219_v21 }
  0x52   : > { %470 = shalt.err (!%p467_p7)
}
  0x53   : > { %s471_s5 = scalar_lea.hbm %s234_s23, 32  ;;  %s475_s21 = scalar_lea.hbm %s734_s2, 64 }
  0x54   : > { %p472_p2 = scmp.ne.s32.totalorder %s234_s23, %s471_s5  ;;  %p476_p13 = scmp.lt.s32.totalorder %s234_s23, %s734_s2 }
  0x55   : > { %p477_p0 = scmp.lt.s32.totalorder %s475_s21, %s471_s5 }
  0x56   : > { %p473_p11 = pnand %p472_p2, %p744_p4 }
  0x57   : > { %p478_p10 = por %p477_p0, %p476_p13 }
  0x58   : > { %p474_p12 = pneg %p473_p11 }
  0x5a   : > { %p479_p1 = pnand %p478_p10, %p474_p12 }
  0x5c   : > { %482 = shalt.err (!%p479_p1)
}
  0x5d   : > { %350 = dma.vmem_to_hbm [thread:$0]  (%p744_p4), %s687_s16, 32, %s234_s23, %s222_s26  }
  0x5e PF: > { %s248_s8 = sand.u32 1, %s521_s9   ;;  %p745_p6 = scmp.ne.s32.totalorder %s739_s20, 0 }
  0x5f   : > { %p746_p8 = scmp.ge.s32.totalorder %s541_s14, 2  ;;  %s249_s15 = scalar_lea.sflag [#allocation4], %s248_s8 }
  0x61   : > { %p361_p9 = pnand %p746_p8, %p745_p6 }
  0x63   : > { %p362_p3 = pneg %p361_p9 }
  0x65   : > { %516 = dma.done.wait (%p362_p3), %s249_s15, 32  }
  0x66   : > { %518 = vsyncadd (%p362_p3), %s249_s15, 4294967264  ;;  %s19_s14 = sadd.s32 1, %s541_s14   ;;  %s747_s9 = smov %s525_s10 }
  0x67   : > { %p16_p5 = scmp.ge.s32.totalorder %s19_s14, 4   ;;  %s748_s10 = smov %s529_s11 }
  0x68   : > { %s749_s11 = smov %s650_s4  ;;  %s750_s12 = smov %s537_s13 }
  0x69   : > { %s751_s13 = smov %s753_s22  ;;  %18 = sbr.rel (!%p16_p5) target bundleno = 7 (0x7), region = 78 }
  0x6e   :  { %254 = vsyncpa [#allocation3], 1 }
  0x6f   :  { %256 = vsyncpa [#allocation3 + $0x1], 1 }
  0x70   :  { %257 = vsyncpa [#allocation4], 1 }
  0x71   :  { %259 = vsyncpa [#allocation4 + $0x1], 1 }
  0x72   :  { %260 = vsyncpa [#allocation5], 1 }
  0x73   :  { %262 = vsyncpa [#allocation5 + $0x1], 1 }

</bundles_post_ra>
